<compile_context>
chip_gen: v7x
topology: tpu7x:2x2x1
jax: 0.10.0
libtpu: 0.0.40
codegen_flags: <defaults>
</compile_context>

<pallas_src>
import functools

import jax
import jax.numpy as jnp
import numpy as np
from jax import lax
from jax.experimental import pallas as pl
from jax.experimental.pallas import tpu as pltpu

GROUPS = (2, 4)


def _fused_conv_kernel(x_ref, w_ref, b_ref, o_ref, *, b_t, k, w_in, l_out):
    """One grid step: B_T images of the fused (both-branch) grouped conv.

    x_ref : (B_T, C_in, L_in)       VMEM  flat images, L_in = H*W + (k-1)*(W+1)
    w_ref : (k*k, C_out, C_in)      VMEM  per-tap dense (zero-expanded) weights
    b_ref : (C_out, 1)              VMEM  fused bias
    o_ref : (B_T, C_out, H*W)       VMEM  wide output (junk cols dropped by wrapper)
    """
    c_out = w_ref.shape[1]
    bias = b_ref[...]                                    # (C_out, 1)
    for b in range(b_t):                                 # static unrolled batch tile
        acc = jnp.zeros((c_out, l_out), jnp.float32)
        for kh in range(k):
            for kw in range(k):
                tap = kh * k + kw
                shift = kh * w_in + kw
                xs = x_ref[b, :, shift:shift + l_out]    # (C_in, l_out) lane slice
                acc = acc + jnp.dot(
                    w_ref[tap], xs,
                    preferred_element_type=jnp.float32,
                    precision=lax.Precision.HIGHEST)
        # Lane-dense (C_out, 256) store — full vregs, no masking.
        o_ref[b, :, :] = (acc + bias).astype(o_ref.dtype)


def fuse_params(params, c_in):
    """Init-time (numpy, NOT traced per call) weight preparation.

    Zero-expands each branch's grouped weights so one dense contraction per tap
    reproduces both grouped convolutions exactly, and lays them out per tap.

    Returns:
      w_taps : (k*k, C_out_total, C_in) float32, tap order (kh, kw)
      bias   : (C_out_total, 1)          float32
    """
    k = int(np.asarray(params[0][0]).shape[-1])
    dense, biases = [], []
    for w, b, g in params:
        w = np.asarray(w)
        b = np.asarray(b)
        c_out_b, c_in_g, _, _ = w.shape
        c_out_pg = c_out_b // g
        wd = np.zeros((c_out_b, c_in, k, k), w.dtype)
        for gi in range(g):
            wd[gi * c_out_pg:(gi + 1) * c_out_pg,
               gi * c_in_g:(gi + 1) * c_in_g] = w[gi * c_out_pg:(gi + 1) * c_out_pg]
        dense.append(wd)
        biases.append(b)
    w_all = np.concatenate(dense, axis=0)                     # (C_out, C_in, k, k)
    c_out = w_all.shape[0]
    # (kh, kw, C_out, C_in) -> (k*k, C_out, C_in); matches the kernel tap order.
    w_taps = np.transpose(w_all, (2, 3, 0, 1)).reshape(k * k, c_out, c_in)
    bias = np.concatenate(biases, axis=0).reshape(-1, 1)
    # TODO(synk): at realistic channel counts keep the weights block-diagonal
    # (per-group dots) instead of zero-expanding to dense (wastes MXU FLOPs).
    return jnp.asarray(w_taps, jnp.float32), jnp.asarray(bias, jnp.float32)


@jax.jit
def kernel_generated_forward(x, w_taps, bias):
    """x: (N, C_in, H, W); w_taps/bias from fuse_params().  Returns NCHW."""
    N, C_in, H, W = x.shape
    kk, C_out, _ = w_taps.shape
    k = int(round(kk ** 0.5))
    H_out, W_out = H - k + 1, W - k + 1

    l_out = H * W                           # wide output row; 256 -> lane dense
    max_shift = (k - 1) * W + (k - 1)       # largest tap offset
    l_in = H * W + max_shift                # padded flat image length

    # Batch tiling: >= 2 grid steps when N >= 2 (keeps both v7x TCs busy),
    # several images per step otherwise (amortizes ~0.35us step overhead),
    # capped so the per-step VMEM block stays small.
    b_t = min(max(1, (N + 1) // 2), 16)
    g_steps = -(-N // b_t)
    n_pad = g_steps * b_t

    # Free metadata reshape + small tail/batch pad so every conv tap is an
    # in-bounds contiguous lane slice.  Padded values only feed columns that
    # the wrapper slice drops, so correctness is unaffected.
    # TODO(synk): for large images, DMA the unpadded image into a VMEM scratch
    # inside the kernel instead of this extra wrapper pass over x.
    x_flat = jnp.pad(x.reshape(N, C_in, H * W),
                     ((0, n_pad - N), (0, 0), (0, max_shift)))

    kernel = functools.partial(_fused_conv_kernel, b_t=b_t, k=k, w_in=W,
                               l_out=l_out)

    out_wide = pl.pallas_call(
        kernel,
        out_shape=jax.ShapeDtypeStruct((n_pad, C_out, l_out), x.dtype),
        grid=(g_steps,),
        in_specs=[
            pl.BlockSpec((b_t, C_in, l_in), lambda n: (n, 0, 0)),
            pl.BlockSpec((kk, C_out, C_in), lambda n: (0, 0, 0)),
            pl.BlockSpec((C_out, 1), lambda n: (0, 0)),
        ],
        out_specs=pl.BlockSpec((b_t, C_out, l_out), lambda n: (n, 0, 0)),
        compiler_params=pltpu.CompilerParams(
            dimension_semantics=("parallel",)),   # batch steps -> both v7x TCs
    )(x_flat, w_taps, bias)

    # Layout plumbing: free reshape, then drop wrap-around / bottom junk cols.
    return out_wide[:N].reshape(N, C_out, H, W)[:, :, :H_out, :W_out]


def _reference_forward(x, params):
    outs = []
    for (w, b, g) in params:
        o = lax.conv_general_dilated(
            x, w, window_strides=(1, 1), padding="VALID",
            dimension_numbers=("NCHW", "OIHW", "NCHW"),
            feature_group_count=g,
            precision=lax.Precision.HIGHEST)
        outs.append(o + b[None, :, None, None])
    return jnp.concatenate(outs, axis=1)


if __name__ == "__main__":
    # Small, module-consistent shapes.
    N, C_in, C_out, H, W, k = 2, 4, 8, 16, 16, 3
    c_out_branch = C_out // len(GROUPS)     # channels produced by each conv branch

    key = jax.random.PRNGKey(0)
    kx, *kps = jax.random.split(key, 1 + 2 * len(GROUPS))

    x = jax.random.normal(kx, (N, C_in, H, W), dtype=jnp.float32)

    params = []
    for i, g in enumerate(GROUPS):
        kw_key, kb_key = kps[2 * i], kps[2 * i + 1]
        fan_in = (C_in // g) * k * k
        bound = 1.0 / np.sqrt(fan_in)
        w = jax.random.uniform(kw_key, (c_out_branch, C_in // g, k, k),
                               minval=-bound, maxval=bound, dtype=jnp.float32)
        b = jax.random.uniform(kb_key, (c_out_branch,),
                               minval=-bound, maxval=bound, dtype=jnp.float32)
        params.append((w, b, g))

    # Init-time weight fusion (numpy; not part of the per-call path).
    w_taps, bias = fuse_params(params, C_in)

    out = jax.block_until_ready(kernel_generated_forward(x, w_taps, bias))
    ref = jax.block_until_ready(_reference_forward(x, params))

    assert out.shape == (N, C_out, H - k + 1, W - k + 1), out.shape
    np.testing.assert_allclose(np.asarray(out), np.asarray(ref),
                               atol=1e-3, rtol=1e-3)

    print("KERNEL_OK")
</pallas_src>

<mosaic_0001>
module attributes {stable_mosaic.version = 11 : i64} {
  func.func @_fused_conv_kernel(%arg0: i32, %arg1: memref<1x4x290xf32, #tpu.memory_space<vmem>>, %arg2: memref<9x8x4xf32, #tpu.memory_space<vmem>>, %arg3: memref<8x1xf32, #tpu.memory_space<vmem>>, %arg4: memref<1x8x256xf32, #tpu.memory_space<vmem>>) attributes {dimension_semantics = [#tpu.dimension_semantics<parallel>], iteration_bounds = array<i64: 2>, scalar_prefetch = 0 : i64, scratch_operands = 0 : i64, tpu.core_type = #tpu.core_type<tc>, window_params = [{transform_indices = @transform_0, window_bounds = array<i64: 1, 4, 290>}, {pipeline_mode = #tpu.pipeline_mode<synchronous>, transform_indices = @transform_1, window_bounds = array<i64: 9, 8, 4>}, {pipeline_mode = #tpu.pipeline_mode<synchronous>, transform_indices = @transform_2, window_bounds = array<i64: 8, 1>}, {transform_indices = @transform_3, window_bounds = array<i64: 1, 8, 256>}]} {
    %c0 = arith.constant 0 : index
    %c0_0 = arith.constant 0 : index
    %0 = vector.load %arg3[%c0, %c0_0] : memref<8x1xf32, #tpu.memory_space<vmem>>, vector<8x1xf32>
    %cst = arith.constant 0.000000e+00 : f32
    %1 = vector.broadcast %cst : f32 to vector<8x256xf32>
    %c0_1 = arith.constant 0 : index
    %c0_2 = arith.constant 0 : index
    %c0_3 = arith.constant 0 : index
    %2 = vector.load %arg1[%c0_1, %c0_2, %c0_3] : memref<1x4x290xf32, #tpu.memory_space<vmem>>, vector<1x4x256xf32>
    %3 = vector.shape_cast %2 : vector<1x4x256xf32> to vector<4x256xf32>
    %c0_4 = arith.constant 0 : index
    %c0_5 = arith.constant 0 : index
    %c0_6 = arith.constant 0 : index
    %4 = vector.load %arg2[%c0_4, %c0_5, %c0_6] : memref<9x8x4xf32, #tpu.memory_space<vmem>>, vector<1x8x4xf32>
    %5 = vector.shape_cast %4 : vector<1x8x4xf32> to vector<8x4xf32>
    %cst_7 = arith.constant dense<0.000000e+00> : vector<8x256xf32>
    %6 = tpu.matmul %5, %3, %cst_7 {dimension_numbers = #tpu.dot_dimension_numbers<[1], [0], [0], [1], [0, 0, 1, 1], [], []>, precision = #tpu.contract_precision<fp32>} : vector<8x4xf32>, vector<4x256xf32>, vector<8x256xf32> -> vector<8x256xf32>
    %7 = arith.addf %1, %6 : vector<8x256xf32>
    %c0_8 = arith.constant 0 : index
    %c0_9 = arith.constant 0 : index
    %c1 = arith.constant 1 : index
    %8 = vector.load %arg1[%c0_8, %c0_9, %c1] : memref<1x4x290xf32, #tpu.memory_space<vmem>>, vector<1x4x256xf32>
    %9 = vector.shape_cast %8 : vector<1x4x256xf32> to vector<4x256xf32>
    %c1_10 = arith.constant 1 : index
    %c0_11 = arith.constant 0 : index
    %c0_12 = arith.constant 0 : index
    %10 = vector.load %arg2[%c1_10, %c0_11, %c0_12] : memref<9x8x4xf32, #tpu.memory_space<vmem>>, vector<1x8x4xf32>
    %11 = vector.shape_cast %10 : vector<1x8x4xf32> to vector<8x4xf32>
    %cst_13 = arith.constant dense<0.000000e+00> : vector<8x256xf32>
    %12 = tpu.matmul %11, %9, %cst_13 {dimension_numbers = #tpu.dot_dimension_numbers<[1], [0], [0], [1], [0, 0, 1, 1], [], []>, precision = #tpu.contract_precision<fp32>} : vector<8x4xf32>, vector<4x256xf32>, vector<8x256xf32> -> vector<8x256xf32>
    %13 = arith.addf %7, %12 : vector<8x256xf32>
    %c0_14 = arith.constant 0 : index
    %c0_15 = arith.constant 0 : index
    %c2 = arith.constant 2 : index
    %14 = vector.load %arg1[%c0_14, %c0_15, %c2] : memref<1x4x290xf32, #tpu.memory_space<vmem>>, vector<1x4x256xf32>
    %15 = vector.shape_cast %14 : vector<1x4x256xf32> to vector<4x256xf32>
    %c2_16 = arith.constant 2 : index
    %c0_17 = arith.constant 0 : index
    %c0_18 = arith.constant 0 : index
    %16 = vector.load %arg2[%c2_16, %c0_17, %c0_18] : memref<9x8x4xf32, #tpu.memory_space<vmem>>, vector<1x8x4xf32>
    %17 = vector.shape_cast %16 : vector<1x8x4xf32> to vector<8x4xf32>
    %cst_19 = arith.constant dense<0.000000e+00> : vector<8x256xf32>
    %18 = tpu.matmul %17, %15, %cst_19 {dimension_numbers = #tpu.dot_dimension_numbers<[1], [0], [0], [1], [0, 0, 1, 1], [], []>, precision = #tpu.contract_precision<fp32>} : vector<8x4xf32>, vector<4x256xf32>, vector<8x256xf32> -> vector<8x256xf32>
    %19 = arith.addf %13, %18 : vector<8x256xf32>
    %c0_20 = arith.constant 0 : index
    %c0_21 = arith.constant 0 : index
    %c16 = arith.constant 16 : index
    %20 = vector.load %arg1[%c0_20, %c0_21, %c16] : memref<1x4x290xf32, #tpu.memory_space<vmem>>, vector<1x4x256xf32>
    %21 = vector.shape_cast %20 : vector<1x4x256xf32> to vector<4x256xf32>
    %c3 = arith.constant 3 : index
    %c0_22 = arith.constant 0 : index
    %c0_23 = arith.constant 0 : index
    %22 = vector.load %arg2[%c3, %c0_22, %c0_23] : memref<9x8x4xf32, #tpu.memory_space<vmem>>, vector<1x8x4xf32>
    %23 = vector.shape_cast %22 : vector<1x8x4xf32> to vector<8x4xf32>
    %cst_24 = arith.constant dense<0.000000e+00> : vector<8x256xf32>
    %24 = tpu.matmul %23, %21, %cst_24 {dimension_numbers = #tpu.dot_dimension_numbers<[1], [0], [0], [1], [0, 0, 1, 1], [], []>, precision = #tpu.contract_precision<fp32>} : vector<8x4xf32>, vector<4x256xf32>, vector<8x256xf32> -> vector<8x256xf32>
    %25 = arith.addf %19, %24 : vector<8x256xf32>
    %c0_25 = arith.constant 0 : index
    %c0_26 = arith.constant 0 : index
    %c17 = arith.constant 17 : index
    %26 = vector.load %arg1[%c0_25, %c0_26, %c17] : memref<1x4x290xf32, #tpu.memory_space<vmem>>, vector<1x4x256xf32>
    %27 = vector.shape_cast %26 : vector<1x4x256xf32> to vector<4x256xf32>
    %c4 = arith.constant 4 : index
    %c0_27 = arith.constant 0 : index
    %c0_28 = arith.constant 0 : index
    %28 = vector.load %arg2[%c4, %c0_27, %c0_28] : memref<9x8x4xf32, #tpu.memory_space<vmem>>, vector<1x8x4xf32>
    %29 = vector.shape_cast %28 : vector<1x8x4xf32> to vector<8x4xf32>
    %cst_29 = arith.constant dense<0.000000e+00> : vector<8x256xf32>
    %30 = tpu.matmul %29, %27, %cst_29 {dimension_numbers = #tpu.dot_dimension_numbers<[1], [0], [0], [1], [0, 0, 1, 1], [], []>, precision = #tpu.contract_precision<fp32>} : vector<8x4xf32>, vector<4x256xf32>, vector<8x256xf32> -> vector<8x256xf32>
    %31 = arith.addf %25, %30 : vector<8x256xf32>
    %c0_30 = arith.constant 0 : index
    %c0_31 = arith.constant 0 : index
    %c18 = arith.constant 18 : index
    %32 = vector.load %arg1[%c0_30, %c0_31, %c18] : memref<1x4x290xf32, #tpu.memory_space<vmem>>, vector<1x4x256xf32>
    %33 = vector.shape_cast %32 : vector<1x4x256xf32> to vector<4x256xf32>
    %c5 = arith.constant 5 : index
    %c0_32 = arith.constant 0 : index
    %c0_33 = arith.constant 0 : index
    %34 = vector.load %arg2[%c5, %c0_32, %c0_33] : memref<9x8x4xf32, #tpu.memory_space<vmem>>, vector<1x8x4xf32>
    %35 = vector.shape_cast %34 : vector<1x8x4xf32> to vector<8x4xf32>
    %cst_34 = arith.constant dense<0.000000e+00> : vector<8x256xf32>
    %36 = tpu.matmul %35, %33, %cst_34 {dimension_numbers = #tpu.dot_dimension_numbers<[1], [0], [0], [1], [0, 0, 1, 1], [], []>, precision = #tpu.contract_precision<fp32>} : vector<8x4xf32>, vector<4x256xf32>, vector<8x256xf32> -> vector<8x256xf32>
    %37 = arith.addf %31, %36 : vector<8x256xf32>
    %c0_35 = arith.constant 0 : index
    %c0_36 = arith.constant 0 : index
    %c32 = arith.constant 32 : index
    %38 = vector.load %arg1[%c0_35, %c0_36, %c32] : memref<1x4x290xf32, #tpu.memory_space<vmem>>, vector<1x4x256xf32>
    %39 = vector.shape_cast %38 : vector<1x4x256xf32> to vector<4x256xf32>
    %c6 = arith.constant 6 : index
    %c0_37 = arith.constant 0 : index
    %c0_38 = arith.constant 0 : index
    %40 = vector.load %arg2[%c6, %c0_37, %c0_38] : memref<9x8x4xf32, #tpu.memory_space<vmem>>, vector<1x8x4xf32>
    %41 = vector.shape_cast %40 : vector<1x8x4xf32> to vector<8x4xf32>
    %cst_39 = arith.constant dense<0.000000e+00> : vector<8x256xf32>
    %42 = tpu.matmul %41, %39, %cst_39 {dimension_numbers = #tpu.dot_dimension_numbers<[1], [0], [0], [1], [0, 0, 1, 1], [], []>, precision = #tpu.contract_precision<fp32>} : vector<8x4xf32>, vector<4x256xf32>, vector<8x256xf32> -> vector<8x256xf32>
    %43 = arith.addf %37, %42 : vector<8x256xf32>
    %c0_40 = arith.constant 0 : index
    %c0_41 = arith.constant 0 : index
    %c33 = arith.constant 33 : index
    %44 = vector.load %arg1[%c0_40, %c0_41, %c33] : memref<1x4x290xf32, #tpu.memory_space<vmem>>, vector<1x4x256xf32>
    %45 = vector.shape_cast %44 : vector<1x4x256xf32> to vector<4x256xf32>
    %c7 = arith.constant 7 : index
    %c0_42 = arith.constant 0 : index
    %c0_43 = arith.constant 0 : index
    %46 = vector.load %arg2[%c7, %c0_42, %c0_43] : memref<9x8x4xf32, #tpu.memory_space<vmem>>, vector<1x8x4xf32>
    %47 = vector.shape_cast %46 : vector<1x8x4xf32> to vector<8x4xf32>
    %cst_44 = arith.constant dense<0.000000e+00> : vector<8x256xf32>
    %48 = tpu.matmul %47, %45, %cst_44 {dimension_numbers = #tpu.dot_dimension_numbers<[1], [0], [0], [1], [0, 0, 1, 1], [], []>, precision = #tpu.contract_precision<fp32>} : vector<8x4xf32>, vector<4x256xf32>, vector<8x256xf32> -> vector<8x256xf32>
    %49 = arith.addf %43, %48 : vector<8x256xf32>
    %c0_45 = arith.constant 0 : index
    %c0_46 = arith.constant 0 : index
    %c34 = arith.constant 34 : index
    %50 = vector.load %arg1[%c0_45, %c0_46, %c34] : memref<1x4x290xf32, #tpu.memory_space<vmem>>, vector<1x4x256xf32>
    %51 = vector.shape_cast %50 : vector<1x4x256xf32> to vector<4x256xf32>
    %c8 = arith.constant 8 : index
    %c0_47 = arith.constant 0 : index
    %c0_48 = arith.constant 0 : index
    %52 = vector.load %arg2[%c8, %c0_47, %c0_48] : memref<9x8x4xf32, #tpu.memory_space<vmem>>, vector<1x8x4xf32>
    %53 = vector.shape_cast %52 : vector<1x8x4xf32> to vector<8x4xf32>
    %cst_49 = arith.constant dense<0.000000e+00> : vector<8x256xf32>
    %54 = tpu.matmul %53, %51, %cst_49 {dimension_numbers = #tpu.dot_dimension_numbers<[1], [0], [0], [1], [0, 0, 1, 1], [], []>, precision = #tpu.contract_precision<fp32>} : vector<8x4xf32>, vector<4x256xf32>, vector<8x256xf32> -> vector<8x256xf32>
    %55 = arith.addf %49, %54 : vector<8x256xf32>
    %56 = vector.broadcast %0 : vector<8x1xf32> to vector<8x256xf32>
    %57 = arith.addf %55, %56 : vector<8x256xf32>
    %c0_50 = arith.constant 0 : index
    %c0_51 = arith.constant 0 : index
    %c0_52 = arith.constant 0 : index
    %58 = vector.load %arg4[%c0_50, %c0_51, %c0_52] : memref<1x8x256xf32, #tpu.memory_space<vmem>>, vector<1x8x256xf32>
    %59 = vector.shape_cast %58 : vector<1x8x256xf32> to vector<8x256xf32>
    %60 = vector.shape_cast %57 : vector<8x256xf32> to vector<1x8x256xf32>
    tpu.vector_store %arg4[%c0_50, %c0_51, %c0_52], %60 {strides = array<i32>} : memref<1x8x256xf32, #tpu.memory_space<vmem>>, vector<1x8x256xf32>,
    return
  }
  func.func @transform_0(%arg0: i32) -> (i32, i32, i32) {
    %c0_i32 = arith.constant 0 : i32
    %c0_i32_0 = arith.constant 0 : i32
    %c0_i32_1 = arith.constant 0 : i32
    return %arg0, %c0_i32, %c0_i32_0 : i32, i32, i32
  }
  func.func @transform_1(%arg0: i32) -> (i32, i32, i32) {
    %c0_i32 = arith.constant 0 : i32
    %c0_i32_0 = arith.constant 0 : i32
    %c0_i32_1 = arith.constant 0 : i32
    %c0_i32_2 = arith.constant 0 : i32
    return %c0_i32, %c0_i32_0, %c0_i32_1 : i32, i32, i32
  }
  func.func @transform_2(%arg0: i32) -> (i32, i32) {
    %c0_i32 = arith.constant 0 : i32
    %c0_i32_0 = arith.constant 0 : i32
    %c0_i32_1 = arith.constant 0 : i32
    return %c0_i32, %c0_i32_0 : i32, i32
  }
  func.func @transform_3(%arg0: i32) -> (i32, i32, i32) {
    %c0_i32 = arith.constant 0 : i32
    %c0_i32_0 = arith.constant 0 : i32
    %c0_i32_1 = arith.constant 0 : i32
    return %arg0, %c0_i32, %c0_i32_0 : i32, i32, i32
  }
}

</mosaic_0001>

<bundles_post_ra>
// kernel: kernel_generated_forward.1
= control target key start
LH: loop header
LB: loop body
LE: loop exit
PB: predicated region body
PF: predicated region fallthrough
CT: control target
= control target key end

     0   :  { %s4813_s12 = smov 0   ;;  %s5361_s0 = inlined_call_operand.vmem [shape: f32[2,4,290], index: 0, kind: input, shape index: {}]   ;;  %s5362_s1 = inlined_call_operand.vmem [shape: f32[9,8,4], index: 1, kind: input, shape index: {}]   ;;  %s5363_s2 = inlined_call_operand.vmem [shape: f32[8,1], index: 2, kind: input, shape index: {}]   ;;  %s5364_s3 = inlined_call_operand.vmem [shape: f32[2,8,256], index: 3, kind: output, shape index: {}]  }
   0x1 LB: > { %s4629_s13 = sadd.s32 4294967295, %s4781_s12   ;;  %p4633_p0 = scmp.ge.s32.totalorder %s4781_s12, 1  ;;  %s4781_s12 = sphi %s4813_s12, %s13_s12  }
   0x2   : > { %p137_p1 = scmp.lt.s32.totalorder %s4781_s12, 3 }
   0x4   : > { %p138_p2 = pnand %p4633_p0, %p137_p1 }
   0x5   : > { %p161_p3 = scmp.lt.s32.totalorder (!%p138_p2), %s4629_s13, 1  ;;  %s4783_s18 = smov (!%p138_p2), 111   ;;  %v4785_v4 = vmov (!%p138_p2), 0.0   ;;  %v4637_v11 = vld [vmem:[%s5362_s1 + $0x8] sm:$0xff] (!%p138_p2)  ;;  %vm189_vm0 = vcmask (!%p138_p2), 31744   ;;  %v4640_v14 = vld [vmem:[%s5362_s1 + $0x20] sm:$0xff] (!%p138_p2) }
   0x6   : > { %141 = sbr.rel (%p138_p2) target bundleno = 573 (0x23d), region = 32  ;;  %s4784_s19 = smov (!%p138_p2), 127   ;;  %264 = vmatprep.mubr.f32.mxu1 (!%p138_p2), %v4785_v4  ;;  %2441 = vmatprep.mubr.f32.mxu0 (!%p138_p2), %v4785_v4  ;;  %v191_v12 = vsel (!%p138_p2), %vm189_vm0, %v4637_v11, 0  ;;  %v2132_v15 = vsel (!%p138_p2), %vm189_vm0, %v4640_v14, 0  ;;  %vm2128_vm1 = vcmask (!%p138_p2), 908288   ;;  %vm186_vm2 = vcmask (!%p138_p2), 1039360  }
   0x7   : > { %s4786_s20 = smov (!%p138_p2), 110   ;;  %s4787_s21 = smov (!%p138_p2), 96   ;;  %v4866_v13 = vand.u32 (!%p138_p2), 4294901760, %v191_v12  ;;  %v4875_v19 = vand.u32 (!%p138_p2), 4294901760, %v2132_v15  ;;  %vm193_vm3 = vcmask (!%p138_p2), 1043456   ;;  %vm2618_vm4 = vcmask (!%p138_p2), 900096  }
   0x8   : > { %s4788_s22 = smov (!%p138_p2), 126   ;;  %s4789_s23 = smov (!%p138_p2), 95   ;;  %v4641_v50 = vld [vmem:[%s5362_s1 + $0x28] sm:$0xff] (!%p138_p2)  ;;  %vm3108_vm5 = vcmask (!%p138_p2), 785408   ;;  %vm1148_vm6 = vcmask (!%p138_p2), 1031168   ;;  %vm3598_vm7 = vcmask (!%p138_p2), 777216  }
   0x9   : > { %s4790_s24 = smov (!%p138_p2), 112   ;;  %s4791_s25 = smov (!%p138_p2), 94   ;;  %v4873_v16 = vsub.f32 (!%p138_p2), %v191_v12, %v4866_v13  ;;  %v4879_v23 = vsub.f32 (!%p138_p2), %v2132_v15, %v4875_v19  ;;  %v2622_v58 = vsel (!%p138_p2), %vm189_vm0, %v4641_v50, 0  ;;  %vm1638_vm8 = vcmask (!%p138_p2), 916480  }
   0xa   : > { %vm4088_vm9 = vcmask (!%p138_p2), 769024  }
   0xb   : > { %v267_v20 = vand.u32 (!%p138_p2), 4294901760, %v4873_v16  ;;  %v2207_v33 = vand.u32 (!%p138_p2), 4294901760, %v4879_v23 }
   0xd   : > { %s5366_s13 = smov (!%p161_p3, %s4629_s13), 1  ;;  %v268_v28 = vsub.f32 %v4873_v16, %v267_v20 }
   0xe   : > { %s4754_s14 = smul.u32 12, %s5366_s13 }
   0xf   : > { %v269_v40 = vand.u32 4294901760, %v268_v28 }
  0x10   : > { %s4827_s17 = scalar_lea.vmem %s5361_s0, %s4754_s14 }
  0x11   : > { %v2116_v0 = vld [vmem:[%s4827_s17 + $0x8] sm:$0xf]  ;;  %v4832_v2 = vld [vmem:[%s4827_s17] sm:$0xff] }
  0x12   : > { %v174_v1 = vld [vmem:[%s4827_s17 + $0x8] sm:$0xf]  ;;  %2126 = vrot.lane.b32.xlu1 %v2116_v0, %s4783_s18  ;;  %v4836_v3 = vcombine.high %v4832_v2, %v4832_v2  ;;  %v4941_v0 = vand.u32 4294901760, %v2622_v58 }
  0x13   : > { %184 = vrot.lane.b32.xlu0 %v174_v1, %s4784_s19  ;;  %v2606_v5 = vld [vmem:[%s4827_s17 + $0x8] sm:$0xf] }
  0x14   : > { %v3096_v6 = vld [vmem:[%s4827_s17 + $0x8] sm:$0xf]  ;;  %v668_v15 = vsel %vm193_vm3, %v4836_v3, 0 }
  0x15   : > { %v1136_v7 = vld [vmem:[%s4827_s17 + $0x8] sm:$0xf] }
  0x16   : > { %2124 = vrot.lane.b32.xlu1 %v4836_v3, %s4783_s18  ;;  %v3586_v8 = vld [vmem:[%s4827_s17 + $0x8] sm:$0xf] }
  0x17   : > { %182 = vrot.lane.b32.xlu0 %v4836_v3, %s4784_s19  ;;  %v1626_v9 = vld [vmem:[%s4827_s17 + $0x8] sm:$0xf] }
  0x18   : > { %v4076_v10 = vld [vmem:[%s4827_s17 + $0x8] sm:$0xf] }
  0x1a   : > { %2122 = vrot.lane.b32.xlu1 %v4832_v2, %s4783_s18 }
  0x1b   : > { %180 = vrot.lane.b32.xlu0 %v4832_v2, %s4784_s19 }
  0x1e   : > { %2616 = vrot.lane.b32.xlu1 %v2606_v5, %s4786_s20 }
  0x1f   : > { %2614 = vrot.lane.b32.xlu0 %v4836_v3, %s4786_s20 }
  0x22   : > { %3104 = vrot.lane.b32.xlu1 %v4836_v3, %s4787_s21 }
  0x23   : > { %2612 = vrot.lane.b32.xlu0 %v4832_v2, %s4786_s20 }
  0x26   : > { %3102 = vrot.lane.b32.xlu1 %v4832_v2, %s4787_s21 }
  0x27   : > { %3106 = vrot.lane.b32.xlu0 %v3096_v6, %s4787_s21  ;;  %v4950_v6 = vsub.f32 %v2622_v58, %v4941_v0  ;;  %s4647_s21 = sshll.u32 %s5366_s13, 4 }
  0x2a   : > { %1146 = vrot.lane.b32.xlu1 %v1136_v7, %s4788_s22 }
  0x2b   : > { %1144 = vrot.lane.b32.xlu0 %v4836_v3, %s4788_s22 }
  0x2e   : > { %3594 = vrot.lane.b32.xlu1 %v4836_v3, %s4789_s23 }
  0x2f   : > { %1142 = vrot.lane.b32.xlu0 %v4832_v2, %s4788_s22 }
  0x32   : > { %3592 = vrot.lane.b32.xlu1 %v4832_v2, %s4789_s23 }
  0x33   : > { %3596 = vrot.lane.b32.xlu0 %v3586_v8, %s4789_s23 }
  0x36   : > { %1636 = vrot.lane.b32.xlu1 %v1626_v9, %s4790_s24  ;;  %v2697_v9 = vand.u32 4294901760, %v4950_v6 }
  0x37   : > { %1634 = vrot.lane.b32.xlu0 %v4836_v3, %s4790_s24 }
  0x38   : > { %v2698_v12 = vsub.f32 %v4950_v6, %v2697_v9 }
  0x3a   : > { %4084 = vrot.lane.b32.xlu1 %v4836_v3, %s4791_s25  ;;  %v666_v3 = vsel %vm193_vm3, %v4832_v2, 0 }
  0x3b   : > { %1632 = vrot.lane.b32.xlu0 %v4832_v2, %s4790_s24  ;;  %s170_s24 = scalar_lea.vmem %s5364_s3, %s4647_s21 }
  0x3e   : > { %4082 = vrot.lane.b32.xlu1 %v4832_v2, %s4791_s25 }
  0x3f   : > { %4086 = vrot.lane.b32.xlu0 %v4076_v10, %s4791_s25 }
  0x84   : > { %v2127_v17 = vpop.permute.xlu1 %2126 }
  0x85   : > { %v185_v18 = vpop.permute.xlu0 %184 }
  0x88   : > { %v2125_v21 = vpop.permute.xlu1 %2124 }
  0x89   : > { %v183_v22 = vpop.permute.xlu0 %182  ;;  %v2130_v24 = vsel %vm2128_vm1, %v2125_v21, %v2127_v17  ;;  %v2699_v17 = vand.u32 4294901760, %v2698_v12 }
  0x8a   : > { %v188_v25 = vsel %vm186_vm2, %v183_v22, %v185_v18  ;;  %v2136_v26 = vsel %vm193_vm3, %v2130_v24, 0 }
  0x8b   : > { %v196_v27 = vsel %vm193_vm3, %v188_v25, 0  ;;  %v4888_v29 = vand.u32 4294901760, %v2136_v26 }
  0x8c   : > { %v4890_v30 = vand.u32 4294901760, %v196_v27  ;;  %v2123_v31 = vpop.permute.xlu1 %2122 }
  0x8d   : > { %v181_v32 = vpop.permute.xlu0 %180  ;;  %v4894_v34 = vsub.f32 %v2136_v26, %v4888_v29  ;;  %v2129_v36 = vsel %vm2128_vm1, %v2123_v31, %v2125_v21  ;;  %2376 = vmatprep.subr.mxu0 %v4888_v29  ;;  %v173_v21 = vld [vmem:[%s5362_s1] sm:$0xff] }
  0x8e   : > { %v4897_v35 = vsub.f32 %v196_v27, %v4890_v30  ;;  %v187_v37 = vsel %vm186_vm2, %v181_v32, %v183_v22  ;;  %199 = vmatprep.subr.mxu1 %v4890_v30  ;;  %v2134_v38 = vsel %vm193_vm3, %v2129_v36, 0  ;;  %v4982_v22 = vand.u32 4294901760, %v668_v15 }
  0x8f   : > { %v194_v39 = vsel %vm193_vm3, %v187_v37, 0  ;;  %v4905_v41 = vand.u32 4294901760, %v2134_v38  ;;  %v2218_v43 = vand.u32 4294901760, %v4894_v34  ;;  %v664_v24 = vsel %vm189_vm0, %v173_v21, 0 }
  0x90   : > { %v4907_v42 = vand.u32 4294901760, %v194_v39  ;;  %v278_v44 = vand.u32 4294901760, %v4897_v35  ;;  %v2617_v46 = vpop.permute.xlu1 %2616  ;;  %v4993_v25 = vsub.f32 %v668_v15, %v4982_v22 }
  0x91   : > { %v2615_v45 = vpop.permute.xlu0 %2614  ;;  %v4912_v47 = vsub.f32 %v2134_v38, %v4905_v41  ;;  %2378 = vmatpush1.msra.mxu0 %v4905_v41 }
  0x92   : > { %v283_v48 = vsub.f32 %v194_v39, %v4907_v42  ;;  %201 = vmatpush1.msra.mxu1 %v4907_v42  ;;  %v279_v49 = vsub.f32 %v4897_v35, %v278_v44  ;;  %2445 = vmatmul.mubr.f32.vlgmr.msra.gmra.mrb[0].mxu0 %v2207_v33  ;;  %v2620_v51 = vsel %vm2618_vm4, %v2615_v45, %v2617_v46  ;;  %v750_v2 = vand.u32 4294901760, %v4993_v25  ;;  %v4642_v46 = vld [vmem:[%s5362_s1 + $0x30] sm:$0xff] }
  0x93   : > { %270 = vmatmul.mubr.f32.vlgmr.msra.gmra.mrb[0].mxu1 %v269_v40  ;;  %2454 = vmatprep.subr.mxu0 %v2218_v43  ;;  %v2224_v54 = vand.u32 4294901760, %v4912_v47  ;;  %v2626_v55 = vsel %vm193_vm3, %v2620_v51, 0 }
  0x94   : > { %v284_v52 = vand.u32 4294901760, %v283_v48  ;;  %v280_v53 = vand.u32 4294901760, %v279_v49  ;;  %350 = vmatprep.mubr.f32.mxu1 %v4785_v4  ;;  %2521 = vmatprep.mubr.f32.mxu0 %v4785_v4  ;;  %v4930_v56 = vand.u32 4294901760, %v2626_v55  ;;  %v3112_v49 = vsel %vm189_vm0, %v4642_v46, 0 }
  0x95   : > { %v2613_v57 = vpop.permute.xlu0 %2612  ;;  %2458 = vmatpush1.msra.mxu0 %v2224_v54 }
  0x96   : > { %281 = vmatprep.subr.mxu1 %v280_v53  ;;  %v285_v59 = vsub.f32 %v283_v48, %v284_v52  ;;  %v2619_v60 = vsel %vm2618_vm4, %v2613_v57, %v2615_v45  ;;  %2530 = vmatprep.subr.mxu0 %v4888_v29  ;;  %v4938_v61 = vsub.f32 %v2626_v55, %v4930_v56 }
  0x97   : > { %v2624_v62 = vsel %vm193_vm3, %v2619_v60, 0 }
  0x98   : > { %v286_v63 = vand.u32 4294901760, %v285_v59  ;;  %v4943_v1 = vand.u32 4294901760, %v2624_v62  ;;  %v2708_v5 = vand.u32 4294901760, %v4938_v61 }
  0x99   : > { %v3107_v32 = vpop.permute.xlu0 %3106 }
  0x9a   : > { %287 = vmatpush1.msra.mxu1 %v286_v63  ;;  %2523 = vmatmul.mubr.f32.vlgmr.msra.gmra.mrb[0].mxu0 %v4875_v19  ;;  %v4955_v7 = vsub.f32 %v2624_v62, %v4943_v1  ;;  %v2709_v8 = vsub.f32 %v4938_v61, %v2708_v5 }
  0x9b   : > { %352 = vmatmul.mubr.f32.vlgmr.msra.gmra.mrb[0].mxu1 %v4866_v13  ;;  %360 = vmatprep.subr.mxu1 %v4897_v35  ;;  %v3105_v35 = vpop.permute.xlu1 %3104 }
  0x9c   : > { %363 = vmatpush1.msra.mxu1 %v283_v48  ;;  %2532 = vmatpush1.msra.mxu0 %v4905_v41  ;;  %v2714_v10 = vand.u32 4294901760, %v4955_v7  ;;  %v2710_v11 = vand.u32 4294901760, %v2709_v8  ;;  %v3110_v39 = vsel %vm3108_vm5, %v3105_v35, %v3107_v32 }
  0x9d   : > { %436 = vmatprep.subr.mxu1 %v4890_v30  ;;  %426 = vmatprep.mubr.f32.mxu1 %v4785_v4  ;;  %v3116_v40 = vsel %vm193_vm3, %v3110_v39, 0 }
  0x9e   : > { %2595 = vmatprep.mubr.f32.mxu0 %v4785_v4  ;;  %2629 = vmatprep.subr.mxu0 %v4930_v56  ;;  %v2715_v14 = vsub.f32 %v4955_v7, %v2714_v10  ;;  %v5036_v45 = vand.u32 4294901760, %v3116_v40 }
  0xa0   : > { %v2716_v18 = vand.u32 4294901760, %v2715_v14  ;;  %v5052_v51 = vsub.f32 %v3116_v40, %v5036_v45 }
  0xa2   : > { %2597 = vmatmul.mubr.f32.vlgmr.msra.gmra.mrb[0].mxu0 %v4875_v19  ;;  %v3198_v55 = vand.u32 4294901760, %v5052_v51 }
  0xa3   : > { %429 = vmatmul.mubr.f32.vlgmr.msra.gmra.mrb[0].mxu1 %v4873_v16  ;;  %2631 = vmatpush1.msra.mxu0 %v4943_v1  ;;  %v4996_v16 = vand.u32 4294901760, %v664_v24 }
  0xa4   : > { %438 = vmatpush1.msra.mxu1 %v4907_v42  ;;  %501 = vmatprep.mubr.f32.mxu1 %v4785_v4  ;;  %v3199_v58 = vsub.f32 %v5052_v51, %v3198_v55 }
  0xa5   : > { %514 = vmatprep.subr.mxu1 %v278_v44  ;;  %2694 = vmatprep.mubr.f32.mxu0 %v4785_v4  ;;  %v5002_v26 = vsub.f32 %v664_v24, %v4996_v16  ;;  %v3103_v44 = vpop.permute.xlu1 %3102 }
  0xa6   : > { %2711 = vmatprep.subr.mxu0 %v2710_v11  ;;  %v3109_v48 = vsel %vm3108_vm5, %v3103_v44, %v3105_v35  ;;  %v3200_v63 = vand.u32 4294901760, %v3199_v58 }
  0xa7   : > { %v739_v28 = vand.u32 4294901760, %v5002_v26  ;;  %v3114_v50 = vsel %vm193_vm3, %v3109_v48, 0 }
  0xa8   : > { %v5057_v53 = vand.u32 4294901760, %v3114_v50 }
  0xa9   : > { %v740_v36 = vsub.f32 %v5002_v26, %v739_v28  ;;  %v1147_v62 = vpop.permute.xlu1 %1146 }
  0xaa   : > { %2700 = vmatmul.mubr.f32.vlgmr.msra.gmra.mrb[0].mxu0 %v2699_v17  ;;  %v5068_v57 = vsub.f32 %v3114_v50, %v5057_v53 }
  0xab   : > { %505 = vmatmul.mubr.f32.vlgmr.msra.gmra.mrb[0].mxu1 %v267_v20  ;;  %2717 = vmatpush1.msra.mxu0 %v2716_v18  ;;  %v4998_v20 = vand.u32 4294901760, %v666_v3 }
  0xac   : > { %518 = vmatpush1.msra.mxu1 %v284_v52  ;;  %2790 = vmatprep.subr.mxu0 %v4938_v61  ;;  %v5055_v52 = vand.u32 4294901760, %v3112_v49  ;;  %v3204_v60 = vand.u32 4294901760, %v5068_v57  ;;  %v1145_v61 = vpop.permute.xlu0 %1144 }
  0xad   : > { %590 = vmatprep.subr.mxu1 %v4890_v30  ;;  %581 = vmatprep.mubr.f32.mxu1 %v4785_v4  ;;  %v5008_v27 = vsub.f32 %v666_v3, %v4998_v20  ;;  %v751_v30 = vsub.f32 %v4993_v25, %v750_v2 }
  0xae   : > { %2780 = vmatprep.mubr.f32.mxu0 %v4785_v4 }
  0xaf   : > { %v756_v31 = vand.u32 4294901760, %v5008_v27  ;;  %v752_v37 = vand.u32 4294901760, %v751_v30  ;;  %v3595_v30 = vpop.permute.xlu1 %3594 }
  0xb1   : > { %v757_v38 = vsub.f32 %v5008_v27, %v756_v31 }
  0xb2   : > { %2782 = vmatmul.mubr.f32.vlgmr.msra.gmra.mrb[0].mxu0 %v4941_v0 }
  0xb3   : > { %583 = vmatmul.mubr.f32.vlgmr.msra.gmra.mrb[0].mxu1 %v4866_v13  ;;  %2793 = vmatpush1.msra.mxu0 %v4955_v7  ;;  %v1143_v7 = vpop.permute.xlu0 %1142 }
  0xb4   : > { %592 = vmatpush1.msra.mxu1 %v4907_v42  ;;  %655 = vmatprep.mubr.f32.mxu1 %v4785_v4  ;;  %v758_v42 = vand.u32 4294901760, %v757_v38  ;;  %v1149_v12 = vsel %vm1148_vm6, %v1143_v7, %v1145_v61  ;;  %v3593_v38 = vpop.permute.xlu1 %3592 }
  0xb5   : > { %2866 = vmatprep.subr.mxu0 %v4930_v56  ;;  %2856 = vmatprep.mubr.f32.mxu0 %v4785_v4  ;;  %v1154_v15 = vsel %vm193_vm3, %v1149_v12, 0  ;;  %v3599_v40 = vsel %vm3598_vm7, %v3593_v38, %v3595_v30 }
  0xb6   : > { %671 = vmatprep.subr.mxu1 %v4982_v22  ;;  %v5116_v21 = vand.u32 4294901760, %v1154_v15  ;;  %v3604_v46 = vsel %vm193_vm3, %v3599_v40, 0 }
  0xb7   : > { %v5178_v50 = vand.u32 4294901760, %v3604_v46 }
  0xba   : > { %2859 = vmatmul.mubr.f32.vlgmr.msra.gmra.mrb[0].mxu0 %v4950_v6  ;;  %v3205_v6 = vsub.f32 %v5068_v57, %v3204_v60 }
  0xbb   : > { %657 = vmatmul.mubr.f32.vlgmr.msra.gmra.mrb[0].mxu1 %v4866_v13  ;;  %2868 = vmatpush1.msra.mxu0 %v4943_v1  ;;  %v741_v13 = vand.u32 4294901760, %v740_v36 }
  0xbc   : > { %673 = vmatpush1.msra.mxu1 %v4998_v20  ;;  %736 = vmatprep.mubr.f32.mxu1 %v4785_v4 }
  0xbd   : > { %2944 = vmatprep.subr.mxu0 %v2708_v5  ;;  %2931 = vmatprep.mubr.f32.mxu0 %v4785_v4  ;;  %v1150_v5 = vsel %vm1148_vm6, %v1145_v61, %v1147_v62 }
  0xbe   : > { %753 = vmatprep.subr.mxu1 %v752_v37 }
  0xc2   : > { %2935 = vmatmul.mubr.f32.vlgmr.msra.gmra.mrb[0].mxu0 %v2697_v9  ;;  %v3206_v9 = vand.u32 4294901760, %v3205_v6 }
  0xc3   : > { %742 = vmatmul.mubr.f32.vlgmr.msra.gmra.mrb[0].mxu1 %v741_v13  ;;  %2948 = vmatpush1.msra.mxu0 %v2714_v10  ;;  %v4638_v10 = vld [vmem:[%s5362_s1 + $0x10] sm:$0xff]  ;;  %v4643_v13 = vld [vmem:[%s5362_s1 + $0x38] sm:$0xff] }
  0xc4   : > { %759 = vmatpush1.msra.mxu1 %v758_v42  ;;  %822 = vmatprep.mubr.f32.mxu1 %v4785_v4  ;;  %v1152_v14 = vsel %vm189_vm0, %v4638_v10, 0  ;;  %v3602_v44 = vsel %vm189_vm0, %v4643_v13, 0 }
  0xc5   : > { %3020 = vmatprep.subr.mxu0 %v4930_v56  ;;  %3011 = vmatprep.mubr.f32.mxu0 %v4785_v4  ;;  %v5064_v56 = vsub.f32 %v3112_v49, %v5055_v52  ;;  %v5114_v18 = vand.u32 4294901760, %v1152_v14  ;;  %v5176_v49 = vand.u32 4294901760, %v3602_v44 }
  0xc6   : > { %832 = vmatprep.subr.mxu1 %v4993_v25  ;;  %v5125_v25 = vsub.f32 %v1154_v15, %v5116_v21 }
  0xc7   : > { %v3187_v59 = vand.u32 4294901760, %v5064_v56  ;;  %v5121_v3 = vsub.f32 %v1152_v14, %v5114_v18 }
  0xca   : > { %3013 = vmatmul.mubr.f32.vlgmr.msra.gmra.mrb[0].mxu0 %v4941_v0 }
  0xcb   : > { %824 = vmatmul.mubr.f32.vlgmr.msra.gmra.mrb[0].mxu1 %v4996_v16  ;;  %3022 = vmatpush1.msra.mxu0 %v4943_v1  ;;  %v3188_v1 = vsub.f32 %v5064_v56, %v3187_v59 }
  0xcc   : > { %835 = vmatpush1.msra.mxu1 %v5008_v27  ;;  %898 = vmatprep.mubr.f32.mxu1 %v4785_v4  ;;  %v1244_v27 = vand.u32 4294901760, %v5125_v25 }
  0xcd   : > { %3085 = vmatprep.mubr.f32.mxu0 %v4785_v4  ;;  %3119 = vmatprep.subr.mxu0 %v5036_v45  ;;  %v3189_v8 = vand.u32 4294901760, %v3188_v1 }
  0xce   : > { %908 = vmatprep.subr.mxu1 %v4982_v22  ;;  %v1245_v35 = vsub.f32 %v5125_v25, %v1244_v27 }
  0xd0   : > { %v1246_v37 = vand.u32 4294901760, %v1245_v35  ;;  %v4644_v35 = vld [vmem:[%s5362_s1 + $0x40] sm:$0xff] }
  0xd2   : > { %3087 = vmatmul.mubr.f32.vlgmr.msra.gmra.mrb[0].mxu0 %v4941_v0  ;;  %v1156_v0 = vsel %vm193_vm3, %v1150_v5, 0 }
  0xd3   : > { %901 = vmatmul.mubr.f32.vlgmr.msra.gmra.mrb[0].mxu1 %v5002_v26  ;;  %3121 = vmatpush1.msra.mxu0 %v5057_v53  ;;  %v5098_v11 = vand.u32 4294901760, %v1156_v0 }
  0xd4   : > { %910 = vmatpush1.msra.mxu1 %v4998_v20  ;;  %973 = vmatprep.mubr.f32.mxu1 %v4785_v4 }
  0xd5   : > { %3184 = vmatprep.mubr.f32.mxu0 %v4785_v4  ;;  %3201 = vmatprep.subr.mxu0 %v3200_v63  ;;  %v5111_v17 = vsub.f32 %v1156_v0, %v5098_v11  ;;  %v4639_v0 = vld [vmem:[%s5362_s1 + $0x18] sm:$0xff] }
  0xd6   : > { %986 = vmatprep.subr.mxu1 %v750_v2  ;;  %v4792_v2 = vmov 0  }
  0xd7   : > { %v1238_v24 = vand.u32 4294901760, %v5111_v17  ;;  %4773 = vset.pattern.permute.xlu0 %v4792_v2 }
  0xd9   : > { %v1239_v26 = vsub.f32 %v5111_v17, %v1238_v24 }
  0xda   : > { %3190 = vmatmul.mubr.f32.vlgmr.msra.gmra.mrb[0].mxu0 %v3189_v8 }
  0xdb   : > { %977 = vmatmul.mubr.f32.vlgmr.msra.gmra.mrb[0].mxu1 %v739_v28  ;;  %3207 = vmatpush1.msra.mxu0 %v3206_v9  ;;  %v1240_v28 = vand.u32 4294901760, %v1239_v26  ;;  %v1642_v9 = vsel %vm189_vm0, %v4639_v0, 0 }
  0xdc   : > { %990 = vmatpush1.msra.mxu1 %v756_v31  ;;  %1053 = vmatprep.mubr.f32.mxu1 %v4785_v4  ;;  %v3597_v31 = vpop.permute.xlu0 %3596  ;;  %v5235_v14 = vand.u32 4294901760, %v1642_v9 }
  0xdd   : > { %3280 = vmatprep.subr.mxu0 %v5052_v51  ;;  %3270 = vmatprep.mubr.f32.mxu0 %v4785_v4  ;;  %v3600_v36 = vsel %vm3598_vm7, %v3595_v30, %v3597_v31 }
  0xde   : > { %1062 = vmatprep.subr.mxu1 %v4982_v22  ;;  %v171_v22 = vld [vmem:[%s5363_s2] sm:$0xff]  ;;  %v3606_v39 = vsel %vm193_vm3, %v3600_v36, 0 }
  0xdf   : > { %4567 = vperm.xlu0 %4773, %v171_v22   ;;  %v5161_v42 = vand.u32 4294901760, %v3606_v39 }
  0xe1   : > { %v5174_v48 = vsub.f32 %v3606_v39, %v5161_v42 }
  0xe2   : > { %3272 = vmatmul.mubr.f32.vlgmr.msra.gmra.mrb[0].mxu0 %v5055_v52 }
  0xe3   : > { %1055 = vmatmul.mubr.f32.vlgmr.msra.gmra.mrb[0].mxu1 %v4996_v16  ;;  %3283 = vmatpush1.msra.mxu0 %v5068_v57  ;;  %v3688_v51 = vand.u32 4294901760, %v5174_v48 }
  0xe4   : > { %1064 = vmatpush1.msra.mxu1 %v4998_v20  ;;  %1127 = vmatprep.mubr.f32.mxu1 %v4785_v4  ;;  %v1227_v20 = vand.u32 4294901760, %v5121_v3 }
  0xe5   : > { %3356 = vmatprep.subr.mxu0 %v5036_v45  ;;  %3346 = vmatprep.mubr.f32.mxu0 %v4785_v4 }
  0xe6   : > { %1159 = vmatprep.subr.mxu1 %v5098_v11  ;;  %v1228_v32 = vsub.f32 %v5121_v3, %v1227_v20 }
  0xea   : > { %3349 = vmatmul.mubr.f32.vlgmr.msra.gmra.mrb[0].mxu0 %v5064_v56  ;;  %v3689_v56 = vsub.f32 %v5174_v48, %v3688_v51 }
  0xeb   : > { %1129 = vmatmul.mubr.f32.vlgmr.msra.gmra.mrb[0].mxu1 %v4996_v16  ;;  %3358 = vmatpush1.msra.mxu0 %v5057_v53  ;;  %v1229_v16 = vand.u32 4294901760, %v1228_v32 }
  0xec   : > { %1161 = vmatpush1.msra.mxu1 %v5116_v21  ;;  %1224 = vmatprep.mubr.f32.mxu1 %v4785_v4 }
  0xed   : > { %3434 = vmatprep.subr.mxu0 %v3198_v55  ;;  %1241 = vmatprep.subr.mxu1 %v1240_v28  ;;  %v5190_v55 = vsub.f32 %v3604_v46, %v5178_v50 }
  0xee   : > { %3421 = vmatprep.mubr.f32.mxu0 %v4785_v4 }
  0xef   : > { %v3694_v58 = vand.u32 4294901760, %v5190_v55 }
  0xf1   : > { %v3695_v63 = vsub.f32 %v5190_v55, %v3694_v58 }
  0xf2   : > { %3425 = vmatmul.mubr.f32.vlgmr.msra.gmra.mrb[0].mxu0 %v3187_v59  ;;  %v1637_v59 = vpop.permute.xlu1 %1636 }
  0xf3   : > { %1230 = vmatmul.mubr.f32.vlgmr.msra.gmra.mrb[0].mxu1 %v1229_v16  ;;  %3438 = vmatpush1.msra.mxu0 %v3204_v60  ;;  %v3690_v60 = vand.u32 4294901760, %v3689_v56  ;;  %v3696_v6 = vand.u32 4294901760, %v3695_v63 }
  0xf4   : > { %1247 = vmatpush1.msra.mxu1 %v1246_v37  ;;  %3510 = vmatprep.subr.mxu0 %v5036_v45  ;;  %v5185_v45 = vsub.f32 %v3602_v44, %v5176_v49  ;;  %v4092_v37 = vsel %vm189_vm0, %v4644_v35, 0 }
  0xf5   : > { %1320 = vmatprep.subr.mxu1 %v5111_v17  ;;  %1310 = vmatprep.mubr.f32.mxu1 %v4785_v4  ;;  %v5292_v13 = vand.u32 4294901760, %v4092_v37 }
  0xf6   : > { %3501 = vmatprep.mubr.f32.mxu0 %v4785_v4  ;;  %v3677_v57 = vand.u32 4294901760, %v5185_v45  ;;  %v4085_v26 = vpop.permute.xlu1 %4084 }
  0xf8   : > { %v3678_v61 = vsub.f32 %v5185_v45, %v3677_v57 }
  0xfa   : > { %3503 = vmatmul.mubr.f32.vlgmr.msra.gmra.mrb[0].mxu0 %v5055_v52  ;;  %v3679_v5 = vand.u32 4294901760, %v3678_v61  ;;  %v4083_v31 = vpop.permute.xlu1 %4082 }
  0xfb   : > { %1312 = vmatmul.mubr.f32.vlgmr.msra.gmra.mrb[0].mxu1 %v5114_v18  ;;  %3512 = vmatpush1.msra.mxu0 %v5057_v53  ;;  %v1635_v53 = vpop.permute.xlu0 %1634  ;;  %v4089_v36 = vsel %vm4088_vm9, %v4083_v31, %v4085_v26 }
  0xfc   : > { %1323 = vmatpush1.msra.mxu1 %v5125_v25  ;;  %1386 = vmatprep.mubr.f32.mxu1 %v4785_v4  ;;  %v1640_v62 = vsel %vm1638_vm8, %v1635_v53, %v1637_v59  ;;  %v4094_v38 = vsel %vm193_vm3, %v4089_v36, 0 }
  0xfd   : > { %1396 = vmatprep.subr.mxu1 %v5098_v11  ;;  %3575 = vmatprep.mubr.f32.mxu0 %v4785_v4  ;;  %v5294_v40 = vand.u32 4294901760, %v4094_v38 }
  0xfe   : > { %3609 = vmatprep.subr.mxu0 %v5161_v42 }
  0xff   : > { %v1633_v1 = vpop.permute.xlu0 %1632  ;;  %v4183_v46 = vsub.f32 %v4094_v38, %v5294_v40 }
 0x100   : > { %v1639_v8 = vsel %vm1638_vm8, %v1633_v1, %v1635_v53  ;;  %v2208_v53 = vsub.f32 %v4879_v23, %v2207_v33 }
 0x101   : > { %v1644_v10 = vsel %vm193_vm3, %v1639_v8, 0 }
 0x102   : > { %3577 = vmatmul.mubr.f32.vlgmr.msra.gmra.mrb[0].mxu0 %v5055_v52  ;;  %v1646_v52 = vsel %vm193_vm3, %v1640_v62, 0  ;;  %v5237_v15 = vand.u32 4294901760, %v1644_v10 }
 0x103   : > { %1389 = vmatmul.mubr.f32.vlgmr.msra.gmra.mrb[0].mxu1 %v5121_v3  ;;  %3611 = vmatpush1.msra.mxu0 %v5178_v50  ;;  %v5219_v7 = vand.u32 4294901760, %v1646_v52 }
 0x104   : > { %1398 = vmatpush1.msra.mxu1 %v5116_v21  ;;  %1461 = vmatprep.mubr.f32.mxu1 %v4785_v4 }
 0x105   : > { %1474 = vmatprep.subr.mxu1 %v1238_v24  ;;  %3674 = vmatprep.mubr.f32.mxu0 %v4785_v4  ;;  %v5232_v12 = vsub.f32 %v1646_v52, %v5219_v7  ;;  %v5247_v24 = vsub.f32 %v1644_v10, %v5237_v15 }
 0x106   : > { %3691 = vmatprep.subr.mxu0 %v3690_v60 }
 0x107   : > { %v1728_v17 = vand.u32 4294901760, %v5232_v12  ;;  %v1734_v25 = vand.u32 4294901760, %v5247_v24 }
 0x109   : > { %v1729_v3 = vsub.f32 %v5232_v12, %v1728_v17 }
 0x10a   : > { %3680 = vmatmul.mubr.f32.vlgmr.msra.gmra.mrb[0].mxu0 %v3679_v5 }
 0x10b   : > { %1465 = vmatmul.mubr.f32.vlgmr.msra.gmra.mrb[0].mxu1 %v1227_v20  ;;  %3697 = vmatpush1.msra.mxu0 %v3696_v6  ;;  %v1730_v22 = vand.u32 4294901760, %v1729_v3  ;;  %v4087_v20 = vpop.permute.xlu0 %4086 }
 0x10c   : > { %1478 = vmatpush1.msra.mxu1 %v1244_v27  ;;  %3770 = vmatprep.subr.mxu0 %v5174_v48  ;;  %v1735_v27 = vsub.f32 %v5247_v24, %v1734_v25  ;;  %v4090_v28 = vsel %vm4088_vm9, %v4085_v26, %v4087_v20 }
 0x10d   : > { %1550 = vmatprep.subr.mxu1 %v5098_v11  ;;  %1541 = vmatprep.mubr.f32.mxu1 %v4785_v4  ;;  %v5242_v11 = vsub.f32 %v1642_v9, %v5235_v14  ;;  %v4096_v32 = vsel %vm193_vm3, %v4090_v28, 0 }
 0x10e   : > { %3760 = vmatprep.mubr.f32.mxu0 %v4785_v4  ;;  %v1736_v30 = vand.u32 4294901760, %v1735_v27  ;;  %v5279_v16 = vand.u32 4294901760, %v4096_v32 }
 0x110   : > { %v4177_v39 = vsub.f32 %v4096_v32, %v5279_v16 }
 0x112   : > { %3762 = vmatmul.mubr.f32.vlgmr.msra.gmra.mrb[0].mxu0 %v5176_v49  ;;  %v4178_v44 = vand.u32 4294901760, %v4177_v39 }
 0x113   : > { %1543 = vmatmul.mubr.f32.vlgmr.msra.gmra.mrb[0].mxu1 %v5114_v18  ;;  %3773 = vmatpush1.msra.mxu0 %v5190_v55 }
 0x114   : > { %1552 = vmatpush1.msra.mxu1 %v5116_v21  ;;  %1615 = vmatprep.mubr.f32.mxu1 %v4785_v4  ;;  %v1717_v21 = vand.u32 4294901760, %v5242_v11  ;;  %v4179_v48 = vsub.f32 %v4177_v39, %v4178_v44 }
 0x115   : > { %3846 = vmatprep.subr.mxu0 %v5161_v42  ;;  %3836 = vmatprep.mubr.f32.mxu0 %v4785_v4 }
 0x116   : > { %1649 = vmatprep.subr.mxu1 %v5219_v7  ;;  %v1718_v2 = vsub.f32 %v5242_v11, %v1717_v21  ;;  %v4180_v55 = vand.u32 4294901760, %v4179_v48 }
 0x11a   : > { %3839 = vmatmul.mubr.f32.vlgmr.msra.gmra.mrb[0].mxu0 %v5185_v45  ;;  %v4184_v45 = vand.u32 4294901760, %v4183_v46 }
 0x11b   : > { %1617 = vmatmul.mubr.f32.vlgmr.msra.gmra.mrb[0].mxu1 %v5114_v18  ;;  %3848 = vmatpush1.msra.mxu0 %v5178_v50  ;;  %v1719_v18 = vand.u32 4294901760, %v1718_v2 }
 0x11c   : > { %1651 = vmatpush1.msra.mxu1 %v5237_v15  ;;  %1714 = vmatprep.mubr.f32.mxu1 %v4785_v4  ;;  %v4185_v56 = vsub.f32 %v4183_v46, %v4184_v45 }
 0x11d   : > { %3924 = vmatprep.subr.mxu0 %v3688_v51  ;;  %1731 = vmatprep.subr.mxu1 %v1730_v22 }
 0x11e   : > { %3911 = vmatprep.mubr.f32.mxu0 %v4785_v4 }
 0x122   : > { %3915 = vmatmul.mubr.f32.vlgmr.msra.gmra.mrb[0].mxu0 %v3677_v57 }
 0x123   : > { %1720 = vmatmul.mubr.f32.vlgmr.msra.gmra.mrb[0].mxu1 %v1719_v18  ;;  %3928 = vmatpush1.msra.mxu0 %v3694_v58  ;;  %v4186_v58 = vand.u32 4294901760, %v4185_v56 }
 0x124   : > { %1737 = vmatpush1.msra.mxu1 %v1736_v30  ;;  %4000 = vmatprep.subr.mxu0 %v5161_v42  ;;  %v4166_v42 = vsub.f32 %v4092_v37, %v5292_v13 }
 0x125   : > { %1810 = vmatprep.subr.mxu1 %v5232_v12  ;;  %1800 = vmatprep.mubr.f32.mxu1 %v4785_v4 }
 0x126   : > { %3991 = vmatprep.mubr.f32.mxu0 %v4785_v4  ;;  %v4167_v51 = vand.u32 4294901760, %v4166_v42 }
 0x12a   : > { %3993 = vmatmul.mubr.f32.vlgmr.msra.gmra.mrb[0].mxu0 %v5176_v49 }
 0x12b   : > { %1802 = vmatmul.mubr.f32.vlgmr.msra.gmra.mrb[0].mxu1 %v5235_v14  ;;  %4002 = vmatpush1.msra.mxu0 %v5178_v50  ;;  %v4168_v50 = vsub.f32 %v4166_v42, %v4167_v51 }
 0x12c   : > { %1813 = vmatpush1.msra.mxu1 %v5247_v24  ;;  %1876 = vmatprep.mubr.f32.mxu1 %v4785_v4 }
 0x12d   : > { %1886 = vmatprep.subr.mxu1 %v5219_v7  ;;  %4065 = vmatprep.mubr.f32.mxu0 %v4785_v4  ;;  %v4169_v57 = vand.u32 4294901760, %v4168_v50 }
 0x12e   : > { %4099 = vmatprep.subr.mxu0 %v5279_v16 }
 0x132   : > { %4067 = vmatmul.mubr.f32.vlgmr.msra.gmra.mrb[0].mxu0 %v5176_v49  ;;  %v2219_v49 = vsub.f32 %v4894_v34, %v2218_v43  ;;  %v2209_v43 = vand.u32 4294901760, %v2208_v53 }
 0x133   : > { %1879 = vmatmul.mubr.f32.vlgmr.msra.gmra.mrb[0].mxu1 %v5242_v11  ;;  %4101 = vmatpush1.msra.mxu0 %v5294_v40 }
 0x134   : > { %1888 = vmatpush1.msra.mxu1 %v5237_v15  ;;  %1951 = vmatprep.mubr.f32.mxu1 %v4785_v4  ;;  %v2220_v59 = vand.u32 4294901760, %v2219_v49 }
 0x135   : > { %1964 = vmatprep.subr.mxu1 %v1728_v17  ;;  %4164 = vmatprep.mubr.f32.mxu0 %v4785_v4 }
 0x136   : > { %4181 = vmatprep.subr.mxu0 %v4180_v55 }
 0x13a   : > { %4170 = vmatmul.mubr.f32.vlgmr.msra.gmra.mrb[0].mxu0 %v4169_v57 }
 0x13b   : > { %1955 = vmatmul.mubr.f32.vlgmr.msra.gmra.mrb[0].mxu1 %v1717_v21  ;;  %4187 = vmatpush1.msra.mxu0 %v4186_v58 }
 0x13c   : > { %1968 = vmatpush1.msra.mxu1 %v1734_v25  ;;  %4260 = vmatprep.subr.mxu0 %v4177_v39 }
 0x13d   : > { %2040 = vmatprep.subr.mxu1 %v5219_v7  ;;  %2031 = vmatprep.mubr.f32.mxu1 %v4785_v4 }
 0x13e   : > { %4250 = vmatprep.mubr.f32.mxu0 %v4785_v4 }
 0x142   : > { %4252 = vmatmul.mubr.f32.vlgmr.msra.gmra.mrb[0].mxu0 %v5292_v13 }
 0x143   : > { %2033 = vmatmul.mubr.f32.vlgmr.msra.gmra.mrb[0].mxu1 %v5235_v14  ;;  %4263 = vmatpush1.msra.mxu0 %v4183_v46 }
 0x144   : > { %2042 = vmatpush1.msra.mxu1 %v5237_v15  ;;  %4336 = vmatprep.subr.mxu0 %v5279_v16 }
 0x145   : > { %2139 = vmatprep.subr.mxu1 %v4888_v29  ;;  %2105 = vmatprep.mubr.f32.mxu1 %v4785_v4  ;;  %v2225_v29 = vsub.f32 %v4912_v47, %v2224_v54 }
 0x146   : > { %4326 = vmatprep.mubr.f32.mxu0 %v4785_v4 }
 0x147   : > { %v2226_v33 = vand.u32 4294901760, %v2225_v29 }
 0x14a   : > { %4329 = vmatmul.mubr.f32.vlgmr.msra.gmra.mrb[0].mxu0 %v4166_v42 }
 0x14b   : > { %2107 = vmatmul.mubr.f32.vlgmr.msra.gmra.mrb[0].mxu1 %v5235_v14  ;;  %4338 = vmatpush1.msra.mxu0 %v5294_v40 }
 0x14c   : > { %2141 = vmatpush1.msra.mxu1 %v4905_v41  ;;  %4414 = vmatprep.subr.mxu0 %v4178_v44 }
 0x14d   : > { %2221 = vmatprep.subr.mxu1 %v2220_v59  ;;  %2204 = vmatprep.mubr.f32.mxu1 %v4785_v4 }
 0x14e   : > { %4401 = vmatprep.mubr.f32.mxu0 %v4785_v4 }
 0x152   : > { %4405 = vmatmul.mubr.f32.vlgmr.msra.gmra.mrb[0].mxu0 %v4167_v51 }
 0x153   : > { %2210 = vmatmul.mubr.f32.vlgmr.msra.gmra.mrb[0].mxu1 %v2209_v43  ;;  %4418 = vmatpush1.msra.mxu0 %v4184_v45 }
 0x154   : > { %2227 = vmatpush1.msra.mxu1 %v2226_v33  ;;  %4490 = vmatprep.subr.mxu0 %v5279_v16 }
 0x155   : > { %2300 = vmatprep.subr.mxu1 %v4894_v34  ;;  %2290 = vmatprep.mubr.f32.mxu1 %v4785_v4 }
 0x156   : > { %4481 = vmatprep.mubr.f32.mxu0 %v4785_v4 }
 0x15a   : > { %4483 = vmatmul.mubr.f32.vlgmr.msra.gmra.mrb[0].mxu0 %v5292_v13 }
 0x15b   : > { %2292 = vmatmul.mubr.f32.vlgmr.msra.gmra.mrb[0].mxu1 %v4875_v19  ;;  %4492 = vmatpush1.msra.mxu0 %v5294_v40 }
 0x15c   : > { %2303 = vmatpush1.msra.mxu1 %v4912_v47  ;;  %2366 = vmatprep.mubr.f32.mxu1 %v4785_v4 }
 0x15d   : > { %4555 = vmatprep.mubr.f32.mxu0 %v4785_v4 }
 0x15e   : > { %v4568_v41 = vpop.permute.xlu0 %4567 }
 0x162   : > { %4557 = vmatmul.mubr.f32.vlgmr.msra.gmra.mrb[0].mxu0 %v5292_v13 }
 0x163   : > { %2369 = vmatmul.mubr.f32.vlgmr.msra.gmra.mrb[0].mxu1 %v4879_v23 }
 0x235   : > { %v4558_v54 = vpop.f32.mrb[0].mxu0 }
 0x236   : > { %v2370_v34 = vpop.f32.mrb[0].mxu1  ;;  %v4560_v61 = vpop.f32.mrb[1].mxu0 }
 0x237   : > { %v2372_v60 = vpop.f32.mrb[1].mxu1  ;;  %v4648_v19 = vadd.f32 %v4558_v54, %v2370_v34 }
 0x238   : > { %v4649_v47 = vadd.f32 %v4560_v61, %v2372_v60 }
 0x239   : > { %v4570_v62 = vadd.f32 %v4648_v19, %v4568_v41 }
 0x23a   : > { %v4571_v63 = vadd.f32 %v4649_v47, %v4568_v41 }
 0x23b   : > { %4572 = vst [vmem:[%s170_s24] sm:$0xff] %v4570_v62 }
 0x23c   : > { %4573 = vst [vmem:[%s170_s24 + $0x8] sm:$0xff] %v4571_v63 }
 0x23d PF: > { %s13_s12 = sadd.s32 1, %s4781_s12  }
 0x23e   : > { %p10_p4 = scmp.ge.s32.totalorder %s13_s12, 4  }
 0x240   :  { %12 = sbr.rel (!%p10_p4) target bundleno = 1 (0x1), region = 70 }

</bundles_post_ra>
